<compile_context>
chip_gen: v5e
topology: v5e:2x2
jax: 0.10.0
libtpu: 0.0.40
codegen_flags: <defaults>
</compile_context>

<pallas_src>
import functools

import jax
import jax.numpy as jnp
from jax.experimental import pallas as pl
from jax.experimental.pallas import tpu as pltpu


def _mean_pool_kernel(x_ref, o_ref, acc_ref, *, inv_n):
    # x_ref:   (TN, TF) input block for this (f-tile, n-chunk)
    # o_ref:   (1, TF)  output tile (same tile across the whole reduction axis)
    # acc_ref: (1, TF)  float32 accumulator scratch
    # inv_n:   Python float (compile-time constant, NOT a captured jax array)
    n_idx = pl.program_id(1)

    @pl.when(n_idx == 0)
    def _():
        acc_ref[...] = jnp.zeros_like(acc_ref)

    acc_ref[...] += x_ref[...].astype(jnp.float32).sum(axis=0, keepdims=True)

    @pl.when(n_idx == pl.num_programs(1) - 1)
    def _():
        o_ref[...] = (acc_ref[...] * inv_n).astype(o_ref.dtype)


def _round_up(a, b):
    return -(-a // b) * b


def mean_pool(x):
    """Mean over axis 0 (PyTorch MeanPool.forward: x.mean(0))."""
    N = x.shape[0]
    tail_shape = x.shape[1:]
    F = 1
    for s in tail_shape:
        F *= s

    x2 = x.reshape(N, F)
    itemsize = x2.dtype.itemsize

    # --- tile selection ---------------------------------------------------
    # Lane tile: full F when small, otherwise a large multiple of 128.
    MAX_TF = 8192                       # lanes per output tile (multiple of 128)
    if F <= MAX_TF:
        TF = F
        F_pad = F
    else:
        TF = MAX_TF
        F_pad = _round_up(F, TF)

    # Reduction-axis chunk: keep each input block ~<= 4 MiB so the two
    # double-buffered input blocks + accumulator fit v7x's 64 MiB VMEM easily.
    budget_bytes = 4 * 1024 * 1024
    tn = max(1, budget_bytes // max(1, TF * itemsize))
    if tn >= N:
        TN = N
        N_pad = N
    else:
        TN = max(8, (tn // 8) * 8)      # sublane-aligned when not the full dim
        N_pad = _round_up(N, TN)

    # Zero-pad ragged tails (zeros don't change the sum; we divide by true N).
    if (N_pad != N) or (F_pad != F):
        x2 = jnp.pad(x2, ((0, N_pad - N), (0, F_pad - F)))

    grid = (F_pad // TF, N_pad // TN)   # (parallel F-tiles, reduction chunks last)

    # Pass the scale as a Python float so it becomes a literal in the kernel
    # (closing over a jnp array raises "captures constants").
    kernel = functools.partial(_mean_pool_kernel, inv_n=float(1.0 / N))

    out = pl.pallas_call(
        kernel,
        out_shape=jax.ShapeDtypeStruct((1, F_pad), x.dtype),
        grid_spec=pltpu.PrefetchScalarGridSpec(
            num_scalar_prefetch=0,
            grid=grid,
            in_specs=[
                pl.BlockSpec((TN, TF), lambda f, n: (n, f)),
            ],
            out_specs=pl.BlockSpec((1, TF), lambda f, n: (0, f)),
            scratch_shapes=[pltpu.VMEM((1, TF), jnp.float32)],
        ),
        compiler_params=pltpu.CompilerParams(
            dimension_semantics=("parallel", "arbitrary"),
            vmem_limit_bytes=32 * 1024 * 1024,
        ),
        cost_estimate=pl.CostEstimate(
            flops=N * F,
            transcendentals=0,
            bytes_accessed=(N * F + F) * itemsize,
        ),
    )(x2)

    return out[0, :F].reshape(tail_shape)


if __name__ == "__main__":
    key = jax.random.PRNGKey(0)
    # seq=8, batch=2, hidden=32 (MeanPool reduces over the leading axis).
    x = jax.random.normal(key, (8, 2, 32), dtype=jnp.float32)

    out = mean_pool(x)
    jax.block_until_ready(out)

    ref = jnp.mean(x, axis=0)
    assert out.shape == ref.shape, (out.shape, ref.shape)
    assert out.dtype == ref.dtype, (out.dtype, ref.dtype)
    assert jnp.allclose(out, ref, atol=1e-5, rtol=1e-5), "mismatch vs jnp.mean"

    print("KERNEL_OK")
</pallas_src>

<mosaic_0001>
module attributes {stable_mosaic.version = 11 : i64} {
  func.func @_mean_pool_kernel(%arg0: i32, %arg1: i32, %arg2: memref<8x64xf32, #tpu.memory_space<vmem>>, %arg3: memref<1x64xf32, #tpu.memory_space<vmem>>, %arg4: memref<1x64xf32, #tpu.memory_space<vmem>>) attributes {dimension_semantics = [#tpu.dimension_semantics<parallel>, #tpu.dimension_semantics<arbitrary>], iteration_bounds = array<i64: 1, 1>, scalar_prefetch = 0 : i64, scratch_operands = 1 : i64, tpu.core_type = #tpu.core_type<tc>, window_params = [{transform_indices = @transform_0, window_bounds = array<i64: 8, 64>}, {transform_indices = @transform_1, window_bounds = array<i64: 1, 64>}]} {
    %c0_i32 = arith.constant 0 : i32
    %0 = arith.cmpi eq, %arg1, %c0_i32 : i32
    %1 = arith.extui %0 : i1 to i32
    %c0_i32_0 = arith.constant 0 : i32
    %2 = arith.cmpi ne, %1, %c0_i32_0 : i32
    scf.if %2 {
      %cst_8 = arith.constant 0.000000e+00 : f32
      %12 = vector.broadcast %cst_8 : f32 to vector<1x64xf32>
      %c0_9 = arith.constant 0 : index
      %c0_10 = arith.constant 0 : index
      %13 = vector.load %arg4[%c0_9, %c0_10] : memref<1x64xf32, #tpu.memory_space<vmem>>, vector<1x64xf32>
      tpu.vector_store %arg4[%c0_9, %c0_10], %12 {strides = array<i32>} : memref<1x64xf32, #tpu.memory_space<vmem>>, vector<1x64xf32>,
    } else {
    }
    %c0 = arith.constant 0 : index
    %c0_1 = arith.constant 0 : index
    %3 = vector.load %arg4[%c0, %c0_1] : memref<1x64xf32, #tpu.memory_space<vmem>>, vector<1x64xf32>
    %c0_2 = arith.constant 0 : index
    %c0_3 = arith.constant 0 : index
    %4 = vector.load %arg2[%c0_2, %c0_3] : memref<8x64xf32, #tpu.memory_space<vmem>>, vector<8x64xf32>
    %cst = arith.constant dense<0.000000e+00> : vector<64xf32>
    %5 = vector.multi_reduction <add>, %4, %cst [0] : vector<8x64xf32> to vector<64xf32>
    %6 = vector.shape_cast %5 : vector<64xf32> to vector<1x64xf32>
    %7 = arith.addf %3, %6 : vector<1x64xf32>
    %c0_4 = arith.constant 0 : index
    %c0_5 = arith.constant 0 : index
    %8 = vector.load %arg4[%c0_4, %c0_5] : memref<1x64xf32, #tpu.memory_space<vmem>>, vector<1x64xf32>
    tpu.vector_store %arg4[%c0_4, %c0_5], %7 {strides = array<i32>} : memref<1x64xf32, #tpu.memory_space<vmem>>, vector<1x64xf32>,
    %c0_i32_6 = arith.constant 0 : i32
    %9 = arith.cmpi eq, %arg1, %c0_i32_6 : i32
    %10 = arith.extui %9 : i1 to i32
    %c0_i32_7 = arith.constant 0 : i32
    %11 = arith.cmpi ne, %10, %c0_i32_7 : i32
    scf.if %11 {
      %c0_8 = arith.constant 0 : index
      %c0_9 = arith.constant 0 : index
      %12 = vector.load %arg4[%c0_8, %c0_9] : memref<1x64xf32, #tpu.memory_space<vmem>>, vector<1x64xf32>
      %cst_10 = arith.constant 1.250000e-01 : f32
      %13 = vector.broadcast %cst_10 : f32 to vector<1x64xf32>
      %14 = arith.mulf %12, %13 : vector<1x64xf32>
      %c0_11 = arith.constant 0 : index
      %c0_12 = arith.constant 0 : index
      %15 = vector.load %arg3[%c0_11, %c0_12] : memref<1x64xf32, #tpu.memory_space<vmem>>, vector<1x64xf32>
      tpu.vector_store %arg3[%c0_11, %c0_12], %14 {strides = array<i32>} : memref<1x64xf32, #tpu.memory_space<vmem>>, vector<1x64xf32>,
    } else {
    }
    return
  }
  func.func @transform_0(%arg0: i32, %arg1: i32) -> (i32, i32) {
    %c0_i32 = arith.constant 0 : i32
    return %arg1, %arg0 : i32, i32
  }
  func.func @transform_1(%arg0: i32, %arg1: i32) -> (i32, i32) {
    %c0_i32 = arith.constant 0 : i32
    %c0_i32_0 = arith.constant 0 : i32
    return %c0_i32, %arg0 : i32, i32
  }
}

</mosaic_0001>

<bundles_post_ra>
// kernel: tpu_custom_call.1
= control target key start
LH: loop header
LB: loop body
LE: loop exit
PB: predicated region body
PF: predicated region fallthrough
CT: control target
= control target key end

     0   :  { %6 = vsyncpa [#allocation4], 0  ;;  %s142_s0 = inlined_call_operand.hbm [shape: f32[8,64], index: 0, kind: input, shape index: {}]   ;;  %s143_s1 = inlined_call_operand.hbm [shape: f32[1,64], index: 1, kind: output, shape index: {}]  }
   0x1   :  { %7 = vsyncpa [#allocation5], 0  ;;  %s13_s8 = sshll.u32 %s142_s0, 4  ;;  %s120_s9 = smov [#allocation3]   ;;  %s14_s8 = int_to_ptr.hbm [resolvable:$true] %s13_s8 }
   0x2   :  { %s15_s10 = sshll.u32 %s120_s9, 4  ;;  %s16_s10 = int_to_ptr.vmem [resolvable:$true] %s15_s10 }
   0x3   :  { %18 = dma.hbm_to_vmem [thread:$0]  %s14_s8, 128, %s16_s10, [#allocation4]  }
   0x4   :  { %116 = dma.done.wait [#allocation4], 128  }
   0x5   :  { %117 = vsyncadd [#allocation4], 4294967168  ;;  %vm27_vm0 = vcmask 516096   ;;  %v121_v0 = vmov 0.0   ;;  %vm31_vm1 = vcmask 523264   ;;  %v30_v1 = vld [vmem:[#allocation3] sm:$0xff] }
   0x6   :  { %28 = vst.msk [vmem:[#allocation2] sm:$0x1] %vm27_vm0, %v121_v0  ;;  %v32_v2 = vsel %vm31_vm1, %v30_v1, 0.0  ;;  %s122_s0 = smov [#allocation6]   ;;  %s55_s14 = sshll.u32 %s143_s1, 4  ;;  %s56_s14 = int_to_ptr.hbm [resolvable:$true] %s55_s14 }
   0x7   :  { %v33_v3 = vrot.slane %v32_v2, 4  ;;  %s53_s11 = sshll.u32 %s122_s0, 4  ;;  %s54_s11 = int_to_ptr.vmem [resolvable:$true] %s53_s11 }
   0x9   :  { %v34_v4 = vadd.f32 %v33_v3, %v32_v2 }
   0xb   :  { %v35_v5 = vrot.slane %v34_v4, 2 }
   0xd   :  { %v36_v6 = vadd.f32 %v35_v5, %v34_v4  ;;  %v29_v8 = vld [vmem:[#allocation2] sm:$0x1] }
   0xf   :  { %v37_v7 = vrot.slane %v36_v6, 1 }
  0x11   :  { %v38_v9 = vadd.f32 %v37_v7, %v36_v6 }
  0x13   :  { %v39_v10 = vadd.f32 %v38_v9, %v29_v8 }
  0x15   :  { %41 = vst.msk [vmem:[#allocation2] sm:$0x1] %vm27_vm0, %v39_v10 }
  0x1c   :  { %v45_v11 = vld [vmem:[#allocation2] sm:$0x1] }
  0x1d   :  { %v46_v12 = vmul.f32 0.125, %v45_v11 }
  0x1f   :  { %47 = vst.msk [vmem:[#allocation6] sm:$0x1] %vm27_vm0, %v46_v12 }
  0x20   :  { %58 = dma.vmem_to_hbm [thread:$0]  %s54_s11, 16, %s56_s14, [#allocation5]  }
  0x21   :  { %118 = dma.done.wait [#allocation5], 16  }
  0x22   :  { %119 = vsyncadd [#allocation5], 4294967280 }
  0x23   :  { %63 = vsyncpa [#allocation4], 1 }
  0x24   :  { %64 = vsyncpa [#allocation5], 1 }

</bundles_post_ra>
